<compile_context>
chip_gen: v7x
topology: tpu7x:2x2x1
jax: 0.10.0
libtpu: 0.0.40
codegen_flags: <defaults>
</compile_context>

<pallas_src>
import functools

import jax
import jax.numpy as jnp
from jax.experimental import pallas as pl
from jax.experimental.pallas import tpu as pltpu


def _causal_conv1d_kernel(x_cur_ref, x_prev_ref, w_ref, b_ref, o_ref, *,
                          K, dilation, pad, t_tile, compute_dtype):
    # x_cur_ref / x_prev_ref: (1, C_in, t_tile)   w_ref: (C_out, K*C_in)
    # b_ref: (C_out, 1) f32                       o_ref: (1, C_out, t_tile)
    cur = x_cur_ref[0]                                       # (C_in, t_tile)

    if pad > 0:
        # Causal halo: last `pad` samples of the previous time tile; zeros on
        # the first tile of every batch element (t == 0).
        halo_w = min(pad, t_tile)
        lead = pad - halo_w                                   # only >0 if pad > t_tile (single-tile case)
        t = pl.program_id(1)
        prev_tail = x_prev_ref[0, :, t_tile - halo_w:]        # (C_in, halo_w)
        halo = jnp.where(t == 0, jnp.zeros_like(prev_tail), prev_tail)
        parts = []
        if lead > 0:
            parts.append(jnp.zeros((cur.shape[0], lead), cur.dtype))
        parts += [halo, cur]
        x_full = jnp.concatenate(parts, axis=-1)              # (C_in, t_tile + pad)
    else:
        x_full = cur

    # Fold the K taps into the matmul contraction dim: build (K*C_in, t_tile)
    # from K shifted views and do a single MXU dot with the (C_out, K*C_in)
    # pre-reshaped weight.  K is small & static -> unrolled.
    taps = [x_full[:, k * dilation: k * dilation + t_tile] for k in range(K)]
    stacked = (jnp.concatenate(taps, axis=0) if K > 1 else taps[0])
    stacked = stacked.astype(compute_dtype)                   # (K*C_in, t_tile)

    acc = jnp.dot(w_ref[...], stacked, preferred_element_type=jnp.float32)
    acc = acc + b_ref[...]                                    # (C_out, 1) broadcasts over time
    o_ref[0] = acc.astype(o_ref.dtype)


def causal_conv1d(x, weight, bias, *, dilation=1, stride=1, groups=1,
                  t_tile=None, compute_dtype=None):
    """x: (N, C_in, T), weight: (C_out, C_in, K), bias: (C_out,) -> (N, C_out, T).

    compute_dtype: dtype for the MXU operands (e.g. jnp.bfloat16); accumulation
    is always f32 and the output keeps x.dtype.
    """
    assert stride == 1 and groups == 1  # TODO(synk): stride>1 / grouped conv not implemented
    N, C_in, T = x.shape
    C_out, C_in_w, K = weight.shape
    assert C_in_w == C_in
    pad = (K - 1) * dilation
    if compute_dtype is None:
        compute_dtype = x.dtype

    # ---- choose a lane-dense time tile -----------------------------------
    # Default sized conservatively so double-buffered tiles fit v7x's smaller
    # (64 MiB physical / 32 MiB scoped) VMEM as well as v5e/v6e.
    if t_tile is None:
        t_tile = T if T <= 2048 else 2048
    if t_tile >= T:
        t_tile = T                                   # single tile covers the full time axis
    else:
        t_tile = max(128, (t_tile // 128) * 128)     # multiple of 128 -> unmasked vst
        if pad > t_tile:                             # causal halo must fit in one previous tile
            t_tile = -(-pad // 128) * 128
        if t_tile >= T:
            t_tile = T
    num_t = -(-T // t_tile)
    T_grid = num_t * t_tile
    assert pad <= t_tile or num_t == 1

    # Right-pad time only if T is not a multiple of the tile (never for the
    # common tile-aligned case); the causal LEFT pad is handled in-kernel.
    x_in = x if T_grid == T else jnp.pad(x, ((0, 0), (0, 0), (0, T_grid - T)))

    # Weight -> (C_out, K*C_in) once in the wrapper (leading-axis/tap-major),
    # cast to the compute dtype once; bias -> (C_out, 1) f32.
    w2d = jnp.transpose(weight, (0, 2, 1)).reshape(C_out, K * C_in).astype(compute_dtype)
    b2d = bias.reshape(C_out, 1).astype(jnp.float32)

    # VMEM budget estimate (f32 upper bound): double-buffered cur/prev/out
    # tiles + resident weight/bias, with ~4x headroom, capped for v7x.
    blk_bytes = 4 * t_tile * (2 * C_in + C_out)
    const_bytes = 4 * (C_out * K * C_in + C_out)
    vmem_limit = int(min(max(4 * (blk_bytes + const_bytes), 32 * 1024 * 1024),
                         64 * 1024 * 1024))

    kernel = functools.partial(_causal_conv1d_kernel, K=K, dilation=dilation,
                               pad=pad, t_tile=t_tile, compute_dtype=compute_dtype)

    out = pl.pallas_call(
        kernel,
        out_shape=jax.ShapeDtypeStruct((N, C_out, T_grid), x.dtype),
        grid_spec=pltpu.PrefetchScalarGridSpec(
            num_scalar_prefetch=0,
            grid=(N, num_t),
            in_specs=[
                # current time tile
                pl.BlockSpec((1, C_in, t_tile), lambda n, t: (n, 0, t)),
                # previous time tile (same array) -> supplies the causal halo
                pl.BlockSpec((1, C_in, t_tile),
                             lambda n, t: (n, 0, jnp.maximum(t - 1, 0))),
                # weight/bias: constant index_map -> fetched once, held resident
                pl.BlockSpec((C_out, K * C_in), lambda n, t: (0, 0)),
                pl.BlockSpec((C_out, 1), lambda n, t: (0, 0)),
            ],
            out_specs=pl.BlockSpec((1, C_out, t_tile), lambda n, t: (n, 0, t)),
        ),
        compiler_params=pltpu.CompilerParams(
            dimension_semantics=("parallel", "parallel"),
            vmem_limit_bytes=vmem_limit),
    )(x_in, x_in, w2d, b2d)

    return out[:, :, :T] if T_grid != T else out


if __name__ == "__main__":
    def reference(x, w, b, dil, pad):
        r = jax.lax.conv_general_dilated(
            x, w, window_strides=(1,), padding=[(pad, 0)],
            rhs_dilation=(dil,), dimension_numbers=("NCH", "OIH", "NCH"))
        return r + b[None, :, None]

    k1, k2, k3, k4, k5, k6 = jax.random.split(jax.random.PRNGKey(0), 6)

    # Case 1: small shapes matching the module's toy config (single time tile).
    N, C_in, C_out, K, dil, T = 2, 4, 8, 3, 2, 16
    bound = (1.0 / (C_in * K)) ** 0.5
    x = jax.random.normal(k1, (N, C_in, T), dtype=jnp.float32)
    w = jax.random.uniform(k2, (C_out, C_in, K), jnp.float32, -bound, bound)
    b = jax.random.uniform(k3, (C_out,), jnp.float32, -bound, bound)

    out = jax.block_until_ready(causal_conv1d(x, w, b, dilation=dil))
    ref = reference(x, w, b, dil, (K - 1) * dil)
    assert out.shape == (N, C_out, T)
    assert jnp.allclose(out, ref, atol=1e-5, rtol=1e-5)

    # Case 2: multiple time tiles (exercises the in-kernel causal halo path).
    N2, C_in2, C_out2, K2, dil2, T2 = 2, 8, 16, 3, 4, 256
    bound2 = (1.0 / (C_in2 * K2)) ** 0.5
    x2 = jax.random.normal(k4, (N2, C_in2, T2), dtype=jnp.float32)
    w2 = jax.random.uniform(k5, (C_out2, C_in2, K2), jnp.float32, -bound2, bound2)
    b2 = jax.random.uniform(k6, (C_out2,), jnp.float32, -bound2, bound2)
    ref2 = reference(x2, w2, b2, dil2, (K2 - 1) * dil2)

    out2 = jax.block_until_ready(causal_conv1d(x2, w2, b2, dilation=dil2, t_tile=128))
    assert out2.shape == (N2, C_out2, T2)
    assert jnp.allclose(out2, ref2, atol=1e-5, rtol=1e-5)

    # Same shapes with bf16 MXU operands (f32 accumulation) -> looser tolerance.
    out2_bf16 = jax.block_until_ready(
        causal_conv1d(x2, w2, b2, dilation=dil2, t_tile=128,
                      compute_dtype=jnp.bfloat16))
    assert jnp.allclose(out2_bf16, ref2, atol=5e-2, rtol=5e-2)

    print("KERNEL_OK")
</pallas_src>

<mosaic_0001>
module attributes {stable_mosaic.version = 11 : i64} {
  func.func @_causal_conv1d_kernel(%arg0: i32, %arg1: i32, %arg2: memref<1x4x16xf32, #tpu.memory_space<vmem>>, %arg3: memref<1x4x16xf32, #tpu.memory_space<vmem>>, %arg4: memref<8x12xf32, #tpu.memory_space<vmem>>, %arg5: memref<8x1xf32, #tpu.memory_space<vmem>>, %arg6: memref<1x8x16xf32, #tpu.memory_space<vmem>>) attributes {dimension_semantics = [#tpu.dimension_semantics<parallel>, #tpu.dimension_semantics<parallel>], iteration_bounds = array<i64: 2, 1>, scalar_prefetch = 0 : i64, scratch_operands = 0 : i64, tpu.core_type = #tpu.core_type<tc>, window_params = [{transform_indices = @transform_0, window_bounds = array<i64: 1, 4, 16>}, {transform_indices = @transform_1, window_bounds = array<i64: 1, 4, 16>}, {pipeline_mode = #tpu.pipeline_mode<synchronous>, transform_indices = @transform_2, window_bounds = array<i64: 8, 12>}, {pipeline_mode = #tpu.pipeline_mode<synchronous>, transform_indices = @transform_3, window_bounds = array<i64: 8, 1>}, {transform_indices = @transform_4, window_bounds = array<i64: 1, 8, 16>}]} {
    %c0 = arith.constant 0 : index
    %c0_0 = arith.constant 0 : index
    %c0_1 = arith.constant 0 : index
    %0 = vector.load %arg2[%c0, %c0_0, %c0_1] : memref<1x4x16xf32, #tpu.memory_space<vmem>>, vector<1x4x16xf32>
    %1 = vector.shape_cast %0 : vector<1x4x16xf32> to vector<4x16xf32>
    %c0_2 = arith.constant 0 : index
    %c0_3 = arith.constant 0 : index
    %c12 = arith.constant 12 : index
    %2 = vector.load %arg3[%c0_2, %c0_3, %c12] : memref<1x4x16xf32, #tpu.memory_space<vmem>>, vector<1x4x4xf32>
    %3 = vector.shape_cast %2 : vector<1x4x4xf32> to vector<4x4xf32>
    %c0_i32 = arith.constant 0 : i32
    %4 = arith.cmpi eq, %arg1, %c0_i32 : i32
    %cst = arith.constant 0.000000e+00 : f32
    %5 = vector.broadcast %cst : f32 to vector<4x4xf32>
    %6 = arith.select %4, %5, %3 : vector<4x4xf32>
    %7 = tpu.concatenate %6, %1 in 1 : vector<4x4xf32>, vector<4x16xf32> -> vector<4x20xf32>
    %8 = vector.extract_strided_slice %7 {offsets = [0, 0], sizes = [4, 16], strides = [1, 1]} : vector<4x20xf32> to vector<4x16xf32>
    %9 = vector.extract_strided_slice %7 {offsets = [0, 2], sizes = [4, 16], strides = [1, 1]} : vector<4x20xf32> to vector<4x16xf32>
    %10 = vector.extract_strided_slice %7 {offsets = [0, 4], sizes = [4, 16], strides = [1, 1]} : vector<4x20xf32> to vector<4x16xf32>
    %11 = tpu.concatenate %8, %9, %10 in 0 : vector<4x16xf32>, vector<4x16xf32>, vector<4x16xf32> -> vector<12x16xf32>
    %c0_4 = arith.constant 0 : index
    %c0_5 = arith.constant 0 : index
    %12 = vector.load %arg4[%c0_4, %c0_5] : memref<8x12xf32, #tpu.memory_space<vmem>>, vector<8x12xf32>
    %cst_6 = arith.constant dense<0.000000e+00> : vector<8x16xf32>
    %13 = tpu.matmul %12, %11, %cst_6 {dimension_numbers = #tpu.dot_dimension_numbers<[1], [0], [0], [1], [0, 0, 1, 1], [], []>} : vector<8x12xf32>, vector<12x16xf32>, vector<8x16xf32> -> vector<8x16xf32>
    %c0_7 = arith.constant 0 : index
    %c0_8 = arith.constant 0 : index
    %14 = vector.load %arg5[%c0_7, %c0_8] : memref<8x1xf32, #tpu.memory_space<vmem>>, vector<8x1xf32>
    %15 = vector.broadcast %14 : vector<8x1xf32> to vector<8x16xf32>
    %16 = arith.addf %13, %15 : vector<8x16xf32>
    %c0_9 = arith.constant 0 : index
    %c0_10 = arith.constant 0 : index
    %c0_11 = arith.constant 0 : index
    %17 = vector.load %arg6[%c0_9, %c0_10, %c0_11] : memref<1x8x16xf32, #tpu.memory_space<vmem>>, vector<1x8x16xf32>
    %18 = vector.shape_cast %17 : vector<1x8x16xf32> to vector<8x16xf32>
    %19 = vector.shape_cast %16 : vector<8x16xf32> to vector<1x8x16xf32>
    tpu.vector_store %arg6[%c0_9, %c0_10, %c0_11], %19 {strides = array<i32>} : memref<1x8x16xf32, #tpu.memory_space<vmem>>, vector<1x8x16xf32>,
    return
  }
  func.func @transform_0(%arg0: i32, %arg1: i32) -> (i32, i32, i32) {
    %c0_i32 = arith.constant 0 : i32
    %c0_i32_0 = arith.constant 0 : i32
    return %arg0, %c0_i32, %arg1 : i32, i32, i32
  }
  func.func @transform_1(%arg0: i32, %arg1: i32) -> (i32, i32, i32) {
    %c1_i32 = arith.constant 1 : i32
    %0 = arith.subi %arg1, %c1_i32 : i32
    %c0_i32 = arith.constant 0 : i32
    %1 = arith.maxsi %0, %c0_i32 : i32
    %c0_i32_0 = arith.constant 0 : i32
    %c0_i32_1 = arith.constant 0 : i32
    return %arg0, %c0_i32_0, %1 : i32, i32, i32
  }
  func.func @transform_2(%arg0: i32, %arg1: i32) -> (i32, i32) {
    %c0_i32 = arith.constant 0 : i32
    %c0_i32_0 = arith.constant 0 : i32
    %c0_i32_1 = arith.constant 0 : i32
    return %c0_i32, %c0_i32_0 : i32, i32
  }
  func.func @transform_3(%arg0: i32, %arg1: i32) -> (i32, i32) {
    %c0_i32 = arith.constant 0 : i32
    %c0_i32_0 = arith.constant 0 : i32
    %c0_i32_1 = arith.constant 0 : i32
    return %c0_i32, %c0_i32_0 : i32, i32
  }
  func.func @transform_4(%arg0: i32, %arg1: i32) -> (i32, i32, i32) {
    %c0_i32 = arith.constant 0 : i32
    %c0_i32_0 = arith.constant 0 : i32
    return %arg0, %c0_i32, %arg1 : i32, i32, i32
  }
}

</mosaic_0001>

<bundles_post_ra>
// kernel: tpu_custom_call.1
= control target key start
LH: loop header
LB: loop body
LE: loop exit
PB: predicated region body
PF: predicated region fallthrough
CT: control target
= control target key end

     0   :  { %9 = vsyncpa [#allocation3], 0  ;;  %s926_s0 = inlined_call_operand.vmem [shape: f32[2,4,16], index: 0, kind: input, shape index: {}]   ;;  %s927_s1 = inlined_call_operand.hbm [shape: f32[2,4,16], index: 1, kind: input, shape index: {}]   ;;  %s928_s2 = inlined_call_operand.vmem [shape: f32[8,12], index: 2, kind: input, shape index: {}]   ;;  %s929_s3 = inlined_call_operand.vmem [shape: f32[8,1], index: 3, kind: input, shape index: {}]   ;;  %s930_s4 = inlined_call_operand.hbm [shape: f32[2,8,16], index: 4, kind: output, shape index: {}]  }
   0x1   :  { %11 = vsyncpa [#allocation3 + $0x1], 0 }
   0x2   :  { %12 = vsyncpa [#allocation4], 0 }
   0x3   :  { %14 = vsyncpa [#allocation4 + $0x1], 0  ;;  %s743_s15 = smov 0   ;;  %s745_s16 = smov 0  }
   0x4   :  { %s747_s17 = smov 0   ;;  %s749_s18 = smov 0  }
   0x5   :  { %s751_s19 = smov 0   ;;  %s753_s20 = smov 0  }
   0x6 LB: > { %s491_s21 = sadd.s32 4294967295, %s705_s20   ;;  %s492_s22 = sadd.s32 4294967294, %s705_s20   ;;  %s705_s20 = sphi %s753_s20, %s20_s20   ;;  %s701_s19 = sphi %s751_s19, %s946_s19   ;;  %s697_s18 = sphi %s749_s18, %s945_s18   ;;  %s693_s17 = sphi %s747_s17, %s944_s17   ;;  %s689_s16 = sphi %s745_s16, %s943_s16   ;;  %s685_s15 = sphi %s743_s15, %s942_s15  }
   0x7   : > { %s32_s23 = sadd.s32 1, %s701_s19  ;;  %s75_s24 = sadd.s32 1, %s693_s17 }
   0x8   : > { %p34_p0 = scmp.ge.s32.totalorder %s32_s23, 2  ;;  %p82_p1 = scmp.ne.s32.totalorder %s693_s17, %s689_s16 }
   0x9   : > { %p83_p2 = scmp.eq.s32.totalorder %s705_s20, 0  ;;  %p88_p3 = scmp.ne.s32.totalorder %s689_s16, %s685_s15 }
   0xa   : > { %s948_s23 = smov (%p34_p0, %s32_s23), 0  ;;  %p89_p5 = scmp.eq.s32.totalorder %s491_s21, 0 }
   0xb   : > { %p784_p4 = por %p83_p2, %p82_p1  ;;  %s70_s26 = ssub.s32 %s701_s19, %s948_s23 }
   0xc   : > { %p156_p6 = scmp.eq.s32.totalorder %s491_s21, 1  ;;  %p73_p7 = scmp.eq.s32.totalorder %s70_s26, 0 }
   0xd   : > { %p790_p8 = por %p89_p5, %p88_p3  ;;  %p162_p10 = scmp.eq.s32.totalorder %s492_s22, 1 }
   0xe   : > { %p794_p9 = por %p156_p6, %p82_p1  ;;  %p533_p13 = scmp.lt.s32.totalorder %s705_s20, 2 }
   0xf   : > { %s799_s29 = scalar_select %p73_p7, %s693_s17, %s75_s24  }
  0x10   : > { %s934_s28 = scalar_select %p794_p9, 1, 0 }
  0x11   : > { %p801_p11 = por %p162_p10, %p88_p3  ;;  %s198_s5 = sand.u32 1, %s693_s17  }
  0x12   : > { %s495_s6 = sshll.u32 %s198_s5, 2  ;;  %s496_s7 = sshll.u32 %s701_s19, 6 }
  0x13   : > { %s935_s30 = scalar_select %p801_p11, 1, 0 }
  0x14   : > { %s812_s10 = scalar_lea.hbm %s927_s1, %s496_s7  ;;  %s202_s11 = scalar_lea.vmem [#allocation2], %s495_s6 }
  0x15   : > { %s213_s12 = sshll.u32 %s202_s11, 4  ;;  %p818_p0 = pnand %p533_p13, %p784_p4  ;;  %s814_s12 = int_to_ptr.vmem [resolvable:$true] %s213_s12 }
  0x16   : > { %s199_s14 = scalar_lea.sflag [#allocation3], %s198_s5  ;;  %s593_s21 = scalar_lea.hbm %s812_s10, 64 }
  0x17   : > { %p594_p3 = scmp.ne.s32.totalorder %s812_s10, %s593_s21  ;;  %p595_p5 = pneg %p818_p0 }
  0x18   : > { %s598_s25 = scalar_lea.hbm %s927_s1, 128  ;;  %p599_p4 = scmp.lt.u32.totalorder %s812_s10, %s927_s1 }
  0x19   : > { %p596_p6 = pnand %p595_p5, %p594_p3  ;;  %p600_p10 = scmp.lt.u32.totalorder %s598_s25, %s593_s21 }
  0x1a   : > { %p602_p12 = scmp.lt.u32.totalorder %s593_s21, %s812_s10 }
  0x1b   : > { %p597_p7 = pneg %p596_p6  ;;  %p601_p13 = por %p600_p10, %p599_p4 }
  0x1d   : > { %p603_p1 = por %p602_p12, %p601_p13 }
  0x1f   : > { %p604_p2 = pnand %p603_p1, %p597_p7 }
  0x21   : > { %607 = shalt.err (!%p604_p2)
}
  0x22   : > { %s608_s5 = scalar_lea.vmem %s814_s12, 64  ;;  %s707_s7 = smov [#allocation2]  }
  0x23   : > { %p609_p3 = scmp.ne.s32.totalorder %s814_s12, %s608_s5  ;;  %s613_s8 = sshll.u32 %s707_s7, 4  ;;  %s614_s8 = int_to_ptr.vmem [resolvable:$false] %s613_s8 }
  0x24   : > { %s615_s9 = scalar_lea.vmem %s614_s8, 128  ;;  %p616_p9 = scmp.lt.s32.totalorder %s814_s12, %s614_s8 }
  0x25   : > { %p611_p6 = pnand %p609_p3, %p595_p5  ;;  %p617_p4 = scmp.lt.s32.totalorder %s615_s9, %s608_s5 }
  0x27   : > { %p612_p11 = pneg %p611_p6  ;;  %p618_p10 = por %p617_p4, %p616_p9 }
  0x29   : > { %p619_p12 = pnand %p618_p10, %p612_p11 }
  0x2b   : > { %622 = shalt.err (!%p619_p12)
}
  0x2c   : > { %528 = dma.hbm_to_vmem [thread:$0]  (!%p818_p0), %s812_s10, 64, %s814_s12, %s199_s14  }
  0x2d   : > { %p937_p1 = scmp.lt.s32.totalorder %s705_s20, 3  ;;  %p938_p2 = scmp.ge.s32.totalorder %s705_s20, 1 }
  0x2f   : > { %p219_p5 = pnand %p938_p2, %p937_p1 }
  0x30   : > { %s854_s11 = sand.u32 (!%p219_p5), 1, %s689_s16  }
  0x31   : > { %222 = sbr.rel (%p219_p5) target bundleno = 534 (0x216), region = 36  ;;  %s225_s21 = scalar_lea.sflag (!%p219_p5), [#allocation3], %s854_s11 }
  0x38   : > { %676 = dma.done.wait (%p790_p8), %s225_s21, 64  }
  0x39   : > { %678 = vsyncadd (%p790_p8), %s225_s21, 4294967232  ;;  %p260_p9 = scmp.lt.s32.totalorder %s697_s18, 1  ;;  %v708_v0 = vmov 0.0   ;;  %s709_s10 = smov 116   ;;  %v711_v3 = vmov 0.0|0.0   ;;  %vm285_vm0 = vcmask 31744  }
  0x3a   : > { %278 = vrot.lane.b32.xlu0 %v708_v0, %s709_s10  ;;  %s710_s25 = smov 4   ;;  %517 = vmatprep.subr.bf16.mxu0 %v711_v3  ;;  %vm712_vm1 = vmmov 0   ;;  %v297_v5 = vld [vmem:[%s929_s3] sm:$0xff]  ;;  %v713_v7 = vmov 0   ;;  %s714_s6 = smov 126   ;;  %vm294_vm2 = vcmask 1043456  }
  0x3b   : > { %s261_s12 = scalar_select %p260_p9, %s697_s18, 1  ;;  %514 = vmatprep.mubr.msk.f32.mxu0 %vm712_vm1, %v708_v0  ;;  %592 = vset.pattern.permute.xlu0 %v713_v7  ;;  %vm716_vm3 = vmmov 1   ;;  %v296_v13 = vld [vmem:[%s928_s2] sm:$0xff]  ;;  %vm303_vm5 = vcmask 97280   ;;  %vm379_vm6 = vcmask 130048  }
  0x3c   : > { %s715_s5 = smov 124   ;;  %vm519_vm4 = vmpackc.low %vm294_vm2, %vm716_vm3  ;;  %s499_s9 = sshll.u32 %s854_s11, 3 }
  0x3d   : > { %s500_s13 = sshll.u32 %s261_s12, 2  ;;  %s504_s21 = sshll.u32 %s697_s18, 7 }
  0x3e   : > { %s266_s24 = scalar_lea.vmem %s926_s0, %s500_s13  ;;  %s259_s10 = scalar_lea.vmem [#allocation5], %s499_s9 }
  0x3f   : > { %v270_v1 = vld [vmem:[%s266_s24] sm:$0xf]  ;;  %s396_s12 = sshll.u32 %s259_s10, 4  ;;  %s877_s22 = scalar_lea.hbm %s930_s4, %s504_s21  ;;  %s879_s12 = int_to_ptr.vmem [resolvable:$true] %s396_s12 }
  0x40   : > { %282 = vrot.lane.b32.xlu0 %v270_v1, %s710_s25  ;;  %s382_s24 = scalar_lea.sflag [#allocation4], %s854_s11  ;;  %s623_s25 = scalar_lea.vmem %s879_s12, 128 }
  0x41   : > { %p624_p8 = scmp.ne.s32.totalorder %s879_s12, %s623_s25  ;;  %p939_p11 = scmp.ne.s32.totalorder %s934_s28, 0 }
  0x42   : > { %s717_s18 = smov [#allocation5]  }
  0x43   : > { %p625_p0 = pnand %p624_p8, %p939_p11  ;;  %s627_s27 = sshll.u32 %s717_s18, 4  ;;  %s628_s27 = int_to_ptr.vmem [resolvable:$false] %s627_s27 }
  0x44   : > { %300 = vperm.xlu0 %592, %v297_v5   ;;  %s629_s26 = scalar_lea.vmem %s628_s27, 256  ;;  %p630_p13 = scmp.lt.s32.totalorder %s879_s12, %s628_s27 }
  0x45   : > { %p626_p7 = pneg %p625_p0  ;;  %p631_p3 = scmp.lt.s32.totalorder %s629_s26, %s623_s25 }
  0x47   : > { %p632_p6 = por %p631_p3, %p630_p13 }
  0x49   : > { %p633_p4 = pnand %p632_p6, %p626_p7 }
  0xac   : > { %v279_v2 = vpop.permute.xlu0 %278 }
  0xb2   : > { %v283_v4 = vpop.permute.xlu0 %282 }
  0xb3   : > { %v286_v6 = vsel %vm285_vm0, %v279_v2, %v283_v4 }
  0xb4   : > { %v288_v8 = vrot.slane %v286_v6, 4 }
  0xb6   : > { %289 = vrot.lane.b32.xlu1 %v288_v8, %s714_s6 }
  0xba   : > { %292 = vrot.lane.b32.xlu1 %v286_v6, %s715_s5 }
  0xc3   : > { %v301_v14 = vpop.permute.xlu0 %300 }
 0x128   : > { %v290_v9 = vpop.permute.xlu1 %289 }
 0x129   : > { %v295_v10 = vsel %vm294_vm2, %v286_v6, %v290_v9 }
 0x12c   : > { %v293_v11 = vpop.permute.xlu1 %292 }
 0x12d   : > { %v518_v12 = vpack.c.bf16 %v293_v11, %v295_v10 }
 0x12f   : > { %520 = vmatpush3.bf16.msk.msra.mxu0 %vm519_vm4, %v518_v12 }
 0x132   : > { %515 = vmatmul.mubr.msk.f32.vlgmr.msra.gmra.mrb[0].mxu0 %vm303_vm5, %v296_v13 }
 0x205   : > { %v375_v15 = vpop.f32.mrb[0].mxu0 }
 0x206   : > { %v376_v16 = vadd.f32 %v375_v15, %v301_v14  ;;  %v516_v17 = vpop.f32.mrb[1].mxu0 }
 0x208   : > { %380 = vst.msk [vmem:[%s259_s10] sm:$0xff] %vm379_vm6, %v376_v16 }
 0x209   : > { %636 = shalt.err (!%p633_p4)
}
 0x20a   : > { %s637_s11 = scalar_lea.hbm %s877_s22, 128  ;;  %s641_s7 = scalar_lea.hbm %s930_s4, 256 }
 0x20b   : > { %p638_p10 = scmp.ne.s32.totalorder %s877_s22, %s637_s11  ;;  %p642_p2 = scmp.lt.u32.totalorder %s877_s22, %s930_s4 }
 0x20c   : > { %p643_p5 = scmp.lt.u32.totalorder %s641_s7, %s637_s11  ;;  %p645_p8 = scmp.lt.u32.totalorder %s637_s11, %s877_s22 }
 0x20d   : > { %p639_p12 = pnand %p638_p10, %p939_p11 }
 0x20e   : > { %p644_p9 = por %p643_p5, %p642_p2 }
 0x20f   : > { %p640_p1 = pneg %p639_p12 }
 0x210   : > { %p646_p0 = por %p645_p8, %p644_p9 }
 0x212   : > { %p647_p7 = pnand %p646_p0, %p640_p1 }
 0x214   : > { %650 = shalt.err (!%p647_p7)
}
 0x215   : > { %523 = dma.vmem_to_hbm [thread:$0]  (%p939_p11), %s879_s12, 128, %s877_s22, %s382_s24  }
 0x216 PF: > { %s408_s21 = sand.u32 1, %s685_s15   ;;  %p940_p13 = scmp.ne.s32.totalorder %s935_s30, 0 }
 0x217   : > { %p941_p3 = scmp.ge.s32.totalorder %s705_s20, 2  ;;  %s409_s10 = scalar_lea.sflag [#allocation4], %s408_s21 }
 0x219   : > { %p530_p6 = pnand %p941_p3, %p940_p13 }
 0x21b   : > { %680 = dma.done.wait (!%p530_p6), %s409_s10, 128  }
 0x21c   : > { %682 = vsyncadd (!%p530_p6), %s409_s10, 4294967168  ;;  %s20_s20 = sadd.s32 1, %s705_s20   ;;  %s942_s15 = smov %s689_s16 }
 0x21d   : > { %p17_p4 = scmp.ge.s32.totalorder %s20_s20, 4   ;;  %s943_s16 = smov %s693_s17 }
 0x21e   : > { %s944_s17 = smov %s799_s29  ;;  %s945_s18 = smov %s701_s19 }
 0x21f   : > { %s946_s19 = smov %s948_s23  ;;  %19 = sbr.rel (!%p17_p4) target bundleno = 6 (0x6), region = 84 }
 0x226   :  { %414 = vsyncpa [#allocation3], 1 }
 0x227   :  { %416 = vsyncpa [#allocation3 + $0x1], 1 }
 0x228   :  { %417 = vsyncpa [#allocation4], 1 }
 0x229   :  { %419 = vsyncpa [#allocation4 + $0x1], 1 }

</bundles_post_ra>
